<compile_context>
chip_gen: v5e
topology: v5e:2x2
jax: 0.10.0
libtpu: 0.0.40
codegen_flags: <defaults>
</compile_context>

<pallas_src>
import functools
import math

import jax
import jax.numpy as jnp
from jax.experimental import pallas as pl
from jax.experimental.pallas import tpu as pltpu

# Cityscapes class weights from the module's __init__ (19 classes).
CLASS_WEIGHTS = [0.8373, 0.918, 0.866, 1.0345, 1.0166, 0.9969, 0.9754, 1.0489,
                 0.8786, 1.0023, 0.9539, 0.9843, 1.1116, 0.9037, 1.0865, 1.0955,
                 1.0865, 1.1529, 1.0507]


def _round_up(x, m):
    return (x + m - 1) // m * m


def _ohem_ce_kernel(ignore_lb, thresh_val, hw, needs_tail_mask,
                    logits_ref, labels_ref, loss_ref, cnt_ref, sum_ref):
    """Per-pixel weighted CE (ignore_index, reduction='none') + fused OHEM stats.

    Block shapes: logits (1, C, T), labels (1, 1, T), loss (1, 1, T),
    cnt/sum partials (1, 1, 128).  Classes on sublanes, pixels on lanes.
    """
    x = logits_ref[...].astype(jnp.float32)          # (1, C, T)
    lbl = labels_ref[...]                            # (1, 1, T) int32
    C = x.shape[1]
    T = x.shape[2]

    valid = lbl != ignore_lb                         # (1, 1, T)
    if needs_tail_mask:
        # Ragged tail of the last tile: mask via global pixel index instead of
        # padding the logits in the wrapper (saves a full HBM read+write pass).
        pix = pl.program_id(1) * T + jax.lax.broadcasted_iota(
            jnp.int32, (1, 1, T), 2)
        in_bounds = pix < hw
        valid = valid & in_bounds

    # Numerically stable log-sum-exp over the class (sublane) axis.
    m = jnp.max(x, axis=1, keepdims=True)            # (1, 1, T)
    z = x - m
    lse = jnp.log(jnp.sum(jnp.exp(z), axis=1, keepdims=True))   # (1, 1, T)

    lbl_safe = jnp.where(valid, lbl, 0)
    ids = jax.lax.broadcasted_iota(jnp.int32, x.shape, 1)        # (1, C, T)
    onehot = ids == lbl_safe                                     # (1, C, T)

    # (1, C, 1) per-class weight column from splat constants; the weight pick
    # rides the same class-axis reduction as the z[y] gather (no per-pixel
    # 19-step select chain).
    cls = jax.lax.broadcasted_iota(jnp.int32, (1, C, 1), 1)
    w_col = jnp.zeros((1, C, 1), jnp.float32)
    for k, wk in enumerate(CLASS_WEIGHTS):
        w_col = jnp.where(cls == k, jnp.float32(wk), w_col)

    # loss = -w[y] * log_softmax(x)[y] = w[y] * (lse - z[y]); ignored -> 0.
    contrib = jnp.where(onehot, w_col * (lse - z), 0.0)          # (1, C, T)
    loss = jnp.sum(contrib, axis=1, keepdims=True)               # (1, 1, T)
    loss = jnp.where(valid, loss, 0.0)
    loss_ref[...] = loss

    # Fused OHEM threshold statistics (per-tile partials, reduced in wrapper).
    gt = loss > thresh_val
    if needs_tail_mask:
        gt = gt & in_bounds
    cnt = jnp.sum(gt.astype(jnp.float32), axis=2, keepdims=True)       # (1,1,1)
    s = jnp.sum(jnp.where(gt, loss, 0.0), axis=2, keepdims=True)       # (1,1,1)
    cnt_ref[...] = jnp.broadcast_to(cnt, cnt_ref.shape)
    sum_ref[...] = jnp.broadcast_to(s, sum_ref.shape)


def weighted_ce_with_stats(logits_nchw, labels_nhw, *, thresh_val,
                           ignore_lb=255, tile_p=32768):
    """Per-pixel weighted CE loss plus fused (count, sum) of loss > thresh."""
    N, C, H, W = logits_nchw.shape
    assert C == len(CLASS_WEIGHTS), "channel count must match class weights"
    HW = H * W

    # Free reshapes (no transpose, no extra HBM pass); keep logits' native
    # dtype (bf16 inputs stream at half the bytes; the kernel casts to f32).
    x = logits_nchw.reshape(N, C, HW)
    lbl = labels_nhw.reshape(N, 1, HW)
    if lbl.dtype != jnp.int32:
        lbl = lbl.astype(jnp.int32)
    # TODO(synk): on v5e, stream labels as uint8 and widen in-kernel to cut the
    # label HBM stream from 4 B to 1 B per pixel.

    # Pixel tile on the lane axis: multiple of 128, clamped to the image.
    tile_p = min(int(tile_p), _round_up(HW, 128))
    tile_p = _round_up(max(tile_p, 128), 128)
    num_tiles = (HW + tile_p - 1) // tile_p
    HWp = num_tiles * tile_p
    needs_tail_mask = HWp != HW        # no jnp.pad: ragged tail masked in-kernel

    grid = (N, num_tiles)
    kernel = functools.partial(_ohem_ce_kernel, ignore_lb, float(thresh_val),
                               HW, needs_tail_mask)
    loss, cnt_p, sum_p = pl.pallas_call(
        kernel,
        out_shape=(
            jax.ShapeDtypeStruct((N, 1, HWp), jnp.float32),
            jax.ShapeDtypeStruct((N, 1, num_tiles * 128), jnp.float32),
            jax.ShapeDtypeStruct((N, 1, num_tiles * 128), jnp.float32),
        ),
        grid_spec=pltpu.PrefetchScalarGridSpec(
            num_scalar_prefetch=0,
            grid=grid,
            in_specs=[
                pl.BlockSpec((1, C, tile_p), lambda n, i: (n, 0, i)),   # logits
                pl.BlockSpec((1, 1, tile_p), lambda n, i: (n, 0, i)),   # labels
            ],
            out_specs=[
                pl.BlockSpec((1, 1, tile_p), lambda n, i: (n, 0, i)),   # loss
                pl.BlockSpec((1, 1, 128), lambda n, i: (n, 0, i)),      # cnt
                pl.BlockSpec((1, 1, 128), lambda n, i: (n, 0, i)),      # sum
            ],
        ),
        compiler_params=pltpu.CompilerParams(
            dimension_semantics=("parallel", "parallel"),
            vmem_limit_bytes=48 * 1024 * 1024),
    )(x, lbl)

    loss_flat = loss[:, 0, :HW].reshape(-1)
    # Each tile's scalar is replicated across 128 lanes; pick lane 0 per tile.
    cnt_gt = jnp.sum(cnt_p[:, 0, ::128].astype(jnp.int32))
    sum_gt = jnp.sum(sum_p[:, 0, ::128])
    return loss_flat, cnt_gt, sum_gt


def per_pixel_weighted_ce(logits_nchw, labels_nhw, ignore_lb=255, tile_p=32768):
    """Pallas nn.CrossEntropyLoss(weight, ignore_index, reduction='none')."""
    loss, _, _ = weighted_ce_with_stats(logits_nchw, labels_nhw, thresh_val=0.0,
                                        ignore_lb=ignore_lb, tile_p=tile_p)
    return loss


def ohem_ce_loss_w(logits, labels, *, thresh, n_min, ignore_lb=255, tile_p=32768):
    """Forward pass of OhemCELossW."""
    # Same f32 threshold as the reference / torch module.
    thresh_val = float(-jnp.log(jnp.asarray(thresh, jnp.float32)))
    loss, cnt_gt, sum_gt = weighted_ce_with_stats(
        logits, labels, thresh_val=thresh_val, ignore_lb=ignore_lb, tile_p=tile_p)
    P = loss.shape[0]
    n_min = int(n_min)

    # loss_sorted[n_min] > thresh  <=>  #{loss > thresh} >= n_min + 1 (ties incl.)
    n_min_eff = min(n_min, P - 1)        # reference's silent index clamp
    cond = cnt_gt >= (n_min_eff + 1)
    mean_gt = sum_gt / jnp.maximum(cnt_gt.astype(jnp.float32), 1.0)

    def _mean_gt_branch():
        return mean_gt

    def _mean_topk_branch():
        # Rare fallback path: torch's dynamic-size slice loss[:n_min] emulated
        # with top_k; only executed when cond is False thanks to lax.cond.
        if n_min == 0:
            return jnp.array(jnp.nan, dtype=jnp.float32)   # torch: empty mean
        k = min(n_min, P)
        vals, _ = jax.lax.top_k(loss, k)
        return jnp.mean(vals)

    return jax.lax.cond(cond, _mean_gt_branch, _mean_topk_branch)


# ----------------------------------------------------------------------------
# Pure-JAX references (validation only)
# ----------------------------------------------------------------------------
def _reference_per_pixel(logits, labels, ignore_lb=255):
    weight = jnp.asarray(CLASS_WEIGHTS, jnp.float32)
    logp = jax.nn.log_softmax(logits.astype(jnp.float32), axis=1)   # (N,C,H,W)
    valid = labels != ignore_lb
    lbl_safe = jnp.where(valid, labels, 0)
    picked = jnp.take_along_axis(logp, lbl_safe[:, None], axis=1)[:, 0]
    w = weight[lbl_safe]
    loss = jnp.where(valid, -w * picked, 0.0)
    return loss.reshape(-1)


def _reference_forward(logits, labels, thresh, n_min, ignore_lb=255):
    thresh_val = -jnp.log(jnp.asarray(thresh, jnp.float32))
    loss = _reference_per_pixel(logits, labels, ignore_lb)
    loss_sorted = jnp.sort(loss)[::-1]
    cond = loss_sorted[n_min] > thresh_val
    mask_gt = loss > thresh_val
    cnt = jnp.maximum(jnp.sum(mask_gt.astype(jnp.float32)), 1.0)
    mean_gt = jnp.sum(jnp.where(mask_gt, loss, 0.0)) / cnt
    mean_topk = jnp.mean(loss_sorted[:n_min])
    return jnp.where(cond, mean_gt, mean_topk)


if __name__ == "__main__":
    key = jax.random.PRNGKey(0)
    k1, k2, k3, k4, k5 = jax.random.split(key, 5)

    N, C, H, W = 2, 19, 16, 16            # C=19 matches the class weights
    n_min = N * H * W // 16               # 32
    thresh = 0.7

    logits = jax.random.normal(k1, (N, C, H, W), dtype=jnp.float32)
    labels = jax.random.randint(k2, (N, H, W), 0, C, dtype=jnp.int32)
    ignore_mask = jax.random.uniform(k3, (N, H, W)) < 0.1
    labels = jnp.where(ignore_mask, 255, labels)

    out = ohem_ce_loss_w(logits, labels, thresh=thresh, n_min=n_min)
    out = jax.block_until_ready(out)

    # 1) Pallas per-pixel CE vs pure-JAX reference.
    pp_pallas = jax.block_until_ready(per_pixel_weighted_ce(logits, labels))
    pp_ref = _reference_per_pixel(logits, labels)
    assert jnp.allclose(pp_pallas, pp_ref, atol=1e-5, rtol=1e-5), "per-pixel mismatch"

    # 2) Full forward (cond=True / mean_gt path in this regime).
    ref_out = _reference_forward(logits, labels, thresh, n_min)
    assert jnp.allclose(out, ref_out, atol=1e-4, rtol=1e-4), "forward mismatch"
    assert jnp.isfinite(out), "non-finite loss"

    # 3) Fallback path (cond=False -> cond-gated top_k branch).
    out_low = jax.block_until_ready(
        ohem_ce_loss_w(logits, labels, thresh=1e-6, n_min=n_min))
    ref_low = _reference_forward(logits, labels, 1e-6, n_min)
    assert jnp.allclose(out_low, ref_low, atol=1e-4, rtol=1e-4), "top_k branch mismatch"

    # 4) Ragged spatial size (HW not a multiple of 128): exercises the
    #    in-kernel tail masking that replaced the wrapper-side jnp.pad.
    Hr = Wr = 12
    logits_r = jax.random.normal(k4, (N, C, Hr, Wr), dtype=jnp.float32)
    labels_r = jax.random.randint(k5, (N, Hr, Wr), 0, C, dtype=jnp.int32)
    pp_r = jax.block_until_ready(per_pixel_weighted_ce(logits_r, labels_r))
    pp_r_ref = _reference_per_pixel(logits_r, labels_r)
    assert jnp.allclose(pp_r, pp_r_ref, atol=1e-5, rtol=1e-5), "ragged-tail mismatch"

    print("KERNEL_OK")
</pallas_src>

<mosaic_0001>
module attributes {stable_mosaic.version = 11 : i64} {
  func.func @_ohem_ce_kernel(%arg0: i32, %arg1: i32, %arg2: memref<1x19x256xf32, #tpu.memory_space<vmem>>, %arg3: memref<1x1x256xi32, #tpu.memory_space<vmem>>, %arg4: memref<1x1x256xf32, #tpu.memory_space<vmem>>, %arg5: memref<1x1x128xf32, #tpu.memory_space<vmem>>, %arg6: memref<1x1x128xf32, #tpu.memory_space<vmem>>) attributes {dimension_semantics = [#tpu.dimension_semantics<parallel>, #tpu.dimension_semantics<parallel>], iteration_bounds = array<i64: 2, 1>, scalar_prefetch = 0 : i64, scratch_operands = 0 : i64, tpu.core_type = #tpu.core_type<tc>, window_params = [{transform_indices = @transform_0, window_bounds = array<i64: 1, 19, 256>}, {transform_indices = @transform_1, window_bounds = array<i64: 1, 1, 256>}, {transform_indices = @transform_2, window_bounds = array<i64: 1, 1, 256>}, {transform_indices = @transform_3, window_bounds = array<i64: 1, 1, 128>}, {transform_indices = @transform_4, window_bounds = array<i64: 1, 1, 128>}]} {
    %c0 = arith.constant 0 : index
    %c0_0 = arith.constant 0 : index
    %c0_1 = arith.constant 0 : index
    %0 = vector.load %arg2[%c0, %c0_0, %c0_1] : memref<1x19x256xf32, #tpu.memory_space<vmem>>, vector<1x19x256xf32>
    %c0_2 = arith.constant 0 : index
    %c0_3 = arith.constant 0 : index
    %c0_4 = arith.constant 0 : index
    %1 = vector.load %arg3[%c0_2, %c0_3, %c0_4] : memref<1x1x256xi32, #tpu.memory_space<vmem>>, vector<1x1x256xi32>
    %c255_i32 = arith.constant 255 : i32
    %2 = vector.broadcast %c255_i32 : i32 to vector<1x1x256xi32>
    %3 = arith.cmpi ne, %1, %2 : vector<1x1x256xi32>
    %cst = arith.constant dense<0xFF800000> : vector<1x256xf32>
    %4 = vector.multi_reduction <maximumf>, %0, %cst [1] : vector<1x19x256xf32> to vector<1x256xf32>
    %5 = vector.shape_cast %4 : vector<1x256xf32> to vector<1x1x256xf32>
    %6 = vector.broadcast %5 : vector<1x1x256xf32> to vector<1x19x256xf32>
    %7 = arith.subf %0, %6 : vector<1x19x256xf32>
    %8 = math.exp %7 : vector<1x19x256xf32>
    %cst_5 = arith.constant dense<0.000000e+00> : vector<1x256xf32>
    %9 = vector.multi_reduction <add>, %8, %cst_5 [1] : vector<1x19x256xf32> to vector<1x256xf32>
    %10 = vector.shape_cast %9 : vector<1x256xf32> to vector<1x1x256xf32>
    %11 = math.log %10 : vector<1x1x256xf32>
    %c0_i32 = arith.constant 0 : i32
    %12 = vector.broadcast %c0_i32 : i32 to vector<1x1x256xi32>
    %13 = arith.select %3, %1, %12 : vector<1x1x256xi1>, vector<1x1x256xi32>
    %14 = tpu.iota {dimensions = array<i32: 1>} : vector<1x19x256xi32>
    %15 = vector.broadcast %13 : vector<1x1x256xi32> to vector<1x19x256xi32>
    %16 = arith.cmpi eq, %14, %15 : vector<1x19x256xi32>
    %17 = tpu.iota {dimensions = array<i32: 1>} : vector<1x19x1xi32>
    %cst_6 = arith.constant 0.000000e+00 : f32
    %18 = vector.broadcast %cst_6 : f32 to vector<1x19x1xf32>
    %c0_i32_7 = arith.constant 0 : i32
    %19 = vector.broadcast %c0_i32_7 : i32 to vector<1x19x1xi32>
    %20 = arith.cmpi eq, %17, %19 : vector<1x19x1xi32>
    %cst_8 = arith.constant 8.373000e-01 : f32
    %21 = vector.broadcast %cst_8 : f32 to vector<1x19x1xf32>
    %22 = arith.select %20, %21, %18 : vector<1x19x1xi1>, vector<1x19x1xf32>
    %c1_i32 = arith.constant 1 : i32
    %23 = vector.broadcast %c1_i32 : i32 to vector<1x19x1xi32>
    %24 = arith.cmpi eq, %17, %23 : vector<1x19x1xi32>
    %cst_9 = arith.constant 9.180000e-01 : f32
    %25 = vector.broadcast %cst_9 : f32 to vector<1x19x1xf32>
    %26 = arith.select %24, %25, %22 : vector<1x19x1xi1>, vector<1x19x1xf32>
    %c2_i32 = arith.constant 2 : i32
    %27 = vector.broadcast %c2_i32 : i32 to vector<1x19x1xi32>
    %28 = arith.cmpi eq, %17, %27 : vector<1x19x1xi32>
    %cst_10 = arith.constant 0.865999996 : f32
    %29 = vector.broadcast %cst_10 : f32 to vector<1x19x1xf32>
    %30 = arith.select %28, %29, %26 : vector<1x19x1xi1>, vector<1x19x1xf32>
    %c3_i32 = arith.constant 3 : i32
    %31 = vector.broadcast %c3_i32 : i32 to vector<1x19x1xi32>
    %32 = arith.cmpi eq, %17, %31 : vector<1x19x1xi32>
    %cst_11 = arith.constant 1.034500e+00 : f32
    %33 = vector.broadcast %cst_11 : f32 to vector<1x19x1xf32>
    %34 = arith.select %32, %33, %30 : vector<1x19x1xi1>, vector<1x19x1xf32>
    %c4_i32 = arith.constant 4 : i32
    %35 = vector.broadcast %c4_i32 : i32 to vector<1x19x1xi32>
    %36 = arith.cmpi eq, %17, %35 : vector<1x19x1xi32>
    %cst_12 = arith.constant 1.016600e+00 : f32
    %37 = vector.broadcast %cst_12 : f32 to vector<1x19x1xf32>
    %38 = arith.select %36, %37, %34 : vector<1x19x1xi1>, vector<1x19x1xf32>
    %c5_i32 = arith.constant 5 : i32
    %39 = vector.broadcast %c5_i32 : i32 to vector<1x19x1xi32>
    %40 = arith.cmpi eq, %17, %39 : vector<1x19x1xi32>
    %cst_13 = arith.constant 9.969000e-01 : f32
    %41 = vector.broadcast %cst_13 : f32 to vector<1x19x1xf32>
    %42 = arith.select %40, %41, %38 : vector<1x19x1xi1>, vector<1x19x1xf32>
    %c6_i32 = arith.constant 6 : i32
    %43 = vector.broadcast %c6_i32 : i32 to vector<1x19x1xi32>
    %44 = arith.cmpi eq, %17, %43 : vector<1x19x1xi32>
    %cst_14 = arith.constant 0.975399971 : f32
    %45 = vector.broadcast %cst_14 : f32 to vector<1x19x1xf32>
    %46 = arith.select %44, %45, %42 : vector<1x19x1xi1>, vector<1x19x1xf32>
    %c7_i32 = arith.constant 7 : i32
    %47 = vector.broadcast %c7_i32 : i32 to vector<1x19x1xi32>
    %48 = arith.cmpi eq, %17, %47 : vector<1x19x1xi32>
    %cst_15 = arith.constant 1.048900e+00 : f32
    %49 = vector.broadcast %cst_15 : f32 to vector<1x19x1xf32>
    %50 = arith.select %48, %49, %46 : vector<1x19x1xi1>, vector<1x19x1xf32>
    %c8_i32 = arith.constant 8 : i32
    %51 = vector.broadcast %c8_i32 : i32 to vector<1x19x1xi32>
    %52 = arith.cmpi eq, %17, %51 : vector<1x19x1xi32>
    %cst_16 = arith.constant 8.786000e-01 : f32
    %53 = vector.broadcast %cst_16 : f32 to vector<1x19x1xf32>
    %54 = arith.select %52, %53, %50 : vector<1x19x1xi1>, vector<1x19x1xf32>
    %c9_i32 = arith.constant 9 : i32
    %55 = vector.broadcast %c9_i32 : i32 to vector<1x19x1xi32>
    %56 = arith.cmpi eq, %17, %55 : vector<1x19x1xi32>
    %cst_17 = arith.constant 1.002300e+00 : f32
    %57 = vector.broadcast %cst_17 : f32 to vector<1x19x1xf32>
    %58 = arith.select %56, %57, %54 : vector<1x19x1xi1>, vector<1x19x1xf32>
    %c10_i32 = arith.constant 10 : i32
    %59 = vector.broadcast %c10_i32 : i32 to vector<1x19x1xi32>
    %60 = arith.cmpi eq, %17, %59 : vector<1x19x1xi32>
    %cst_18 = arith.constant 0.953899979 : f32
    %61 = vector.broadcast %cst_18 : f32 to vector<1x19x1xf32>
    %62 = arith.select %60, %61, %58 : vector<1x19x1xi1>, vector<1x19x1xf32>
    %c11_i32 = arith.constant 11 : i32
    %63 = vector.broadcast %c11_i32 : i32 to vector<1x19x1xi32>
    %64 = arith.cmpi eq, %17, %63 : vector<1x19x1xi32>
    %cst_19 = arith.constant 9.843000e-01 : f32
    %65 = vector.broadcast %cst_19 : f32 to vector<1x19x1xf32>
    %66 = arith.select %64, %65, %62 : vector<1x19x1xi1>, vector<1x19x1xf32>
    %c12_i32 = arith.constant 12 : i32
    %67 = vector.broadcast %c12_i32 : i32 to vector<1x19x1xi32>
    %68 = arith.cmpi eq, %17, %67 : vector<1x19x1xi32>
    %cst_20 = arith.constant 1.111600e+00 : f32
    %69 = vector.broadcast %cst_20 : f32 to vector<1x19x1xf32>
    %70 = arith.select %68, %69, %66 : vector<1x19x1xi1>, vector<1x19x1xf32>
    %c13_i32 = arith.constant 13 : i32
    %71 = vector.broadcast %c13_i32 : i32 to vector<1x19x1xi32>
    %72 = arith.cmpi eq, %17, %71 : vector<1x19x1xi32>
    %cst_21 = arith.constant 0.903699994 : f32
    %73 = vector.broadcast %cst_21 : f32 to vector<1x19x1xf32>
    %74 = arith.select %72, %73, %70 : vector<1x19x1xi1>, vector<1x19x1xf32>
    %c14_i32 = arith.constant 14 : i32
    %75 = vector.broadcast %c14_i32 : i32 to vector<1x19x1xi32>
    %76 = arith.cmpi eq, %17, %75 : vector<1x19x1xi32>
    %cst_22 = arith.constant 1.086500e+00 : f32
    %77 = vector.broadcast %cst_22 : f32 to vector<1x19x1xf32>
    %78 = arith.select %76, %77, %74 : vector<1x19x1xi1>, vector<1x19x1xf32>
    %c15_i32 = arith.constant 15 : i32
    %79 = vector.broadcast %c15_i32 : i32 to vector<1x19x1xi32>
    %80 = arith.cmpi eq, %17, %79 : vector<1x19x1xi32>
    %cst_23 = arith.constant 1.095500e+00 : f32
    %81 = vector.broadcast %cst_23 : f32 to vector<1x19x1xf32>
    %82 = arith.select %80, %81, %78 : vector<1x19x1xi1>, vector<1x19x1xf32>
    %c16_i32 = arith.constant 16 : i32
    %83 = vector.broadcast %c16_i32 : i32 to vector<1x19x1xi32>
    %84 = arith.cmpi eq, %17, %83 : vector<1x19x1xi32>
    %cst_24 = arith.constant 1.086500e+00 : f32
    %85 = vector.broadcast %cst_24 : f32 to vector<1x19x1xf32>
    %86 = arith.select %84, %85, %82 : vector<1x19x1xi1>, vector<1x19x1xf32>
    %c17_i32 = arith.constant 17 : i32
    %87 = vector.broadcast %c17_i32 : i32 to vector<1x19x1xi32>
    %88 = arith.cmpi eq, %17, %87 : vector<1x19x1xi32>
    %cst_25 = arith.constant 1.152900e+00 : f32
    %89 = vector.broadcast %cst_25 : f32 to vector<1x19x1xf32>
    %90 = arith.select %88, %89, %86 : vector<1x19x1xi1>, vector<1x19x1xf32>
    %c18_i32 = arith.constant 18 : i32
    %91 = vector.broadcast %c18_i32 : i32 to vector<1x19x1xi32>
    %92 = arith.cmpi eq, %17, %91 : vector<1x19x1xi32>
    %cst_26 = arith.constant 1.050700e+00 : f32
    %93 = vector.broadcast %cst_26 : f32 to vector<1x19x1xf32>
    %94 = arith.select %92, %93, %90 : vector<1x19x1xi1>, vector<1x19x1xf32>
    %95 = vector.broadcast %11 : vector<1x1x256xf32> to vector<1x19x256xf32>
    %96 = arith.subf %95, %7 : vector<1x19x256xf32>
    %97 = vector.broadcast %94 : vector<1x19x1xf32> to vector<1x19x256xf32>
    %98 = arith.mulf %97, %96 : vector<1x19x256xf32>
    %cst_27 = arith.constant 0.000000e+00 : f32
    %99 = vector.broadcast %cst_27 : f32 to vector<1x19x256xf32>
    %100 = arith.select %16, %98, %99 : vector<1x19x256xi1>, vector<1x19x256xf32>
    %cst_28 = arith.constant dense<0.000000e+00> : vector<1x256xf32>
    %101 = vector.multi_reduction <add>, %100, %cst_28 [1] : vector<1x19x256xf32> to vector<1x256xf32>
    %102 = vector.shape_cast %101 : vector<1x256xf32> to vector<1x1x256xf32>
    %cst_29 = arith.constant 0.000000e+00 : f32
    %103 = vector.broadcast %cst_29 : f32 to vector<1x1x256xf32>
    %104 = arith.select %3, %102, %103 : vector<1x1x256xi1>, vector<1x1x256xf32>
    %c0_30 = arith.constant 0 : index
    %c0_31 = arith.constant 0 : index
    %c0_32 = arith.constant 0 : index
    %105 = vector.load %arg4[%c0_30, %c0_31, %c0_32] : memref<1x1x256xf32, #tpu.memory_space<vmem>>, vector<1x1x256xf32>
    tpu.vector_store %arg4[%c0_30, %c0_31, %c0_32], %104 {strides = array<i32>} : memref<1x1x256xf32, #tpu.memory_space<vmem>>, vector<1x1x256xf32>,
    %cst_33 = arith.constant 0.356674969 : f32
    %106 = vector.broadcast %cst_33 : f32 to vector<1x1x256xf32>
    %107 = arith.cmpf ogt, %104, %106 : vector<1x1x256xf32>
    %108 = arith.extui %107 : vector<1x1x256xi1> to vector<1x1x256xi32>
    %109 = arith.sitofp %108 : vector<1x1x256xi32> to vector<1x1x256xf32>
    %cst_34 = arith.constant dense<0.000000e+00> : vector<1x1xf32>
    %110 = vector.multi_reduction <add>, %109, %cst_34 [2] : vector<1x1x256xf32> to vector<1x1xf32>
    %111 = vector.shape_cast %110 : vector<1x1xf32> to vector<1x1x1xf32>
    %cst_35 = arith.constant 0.000000e+00 : f32
    %112 = vector.broadcast %cst_35 : f32 to vector<1x1x256xf32>
    %113 = arith.select %107, %104, %112 : vector<1x1x256xi1>, vector<1x1x256xf32>
    %cst_36 = arith.constant dense<0.000000e+00> : vector<1x1xf32>
    %114 = vector.multi_reduction <add>, %113, %cst_36 [2] : vector<1x1x256xf32> to vector<1x1xf32>
    %115 = vector.shape_cast %114 : vector<1x1xf32> to vector<1x1x1xf32>
    %116 = vector.shape_cast %111 : vector<1x1x1xf32> to vector<1x1x1xf32>
    %117 = vector.broadcast %116 : vector<1x1x1xf32> to vector<1x1x128xf32>
    %c0_37 = arith.constant 0 : index
    %c0_38 = arith.constant 0 : index
    %c0_39 = arith.constant 0 : index
    %118 = vector.load %arg5[%c0_37, %c0_38, %c0_39] : memref<1x1x128xf32, #tpu.memory_space<vmem>>, vector<1x1x128xf32>
    tpu.vector_store %arg5[%c0_37, %c0_38, %c0_39], %117 {strides = array<i32>} : memref<1x1x128xf32, #tpu.memory_space<vmem>>, vector<1x1x128xf32>,
    %119 = vector.shape_cast %115 : vector<1x1x1xf32> to vector<1x1x1xf32>
    %120 = vector.broadcast %119 : vector<1x1x1xf32> to vector<1x1x128xf32>
    %c0_40 = arith.constant 0 : index
    %c0_41 = arith.constant 0 : index
    %c0_42 = arith.constant 0 : index
    %121 = vector.load %arg6[%c0_40, %c0_41, %c0_42] : memref<1x1x128xf32, #tpu.memory_space<vmem>>, vector<1x1x128xf32>
    tpu.vector_store %arg6[%c0_40, %c0_41, %c0_42], %120 {strides = array<i32>} : memref<1x1x128xf32, #tpu.memory_space<vmem>>, vector<1x1x128xf32>,
    return
  }
  func.func @transform_0(%arg0: i32, %arg1: i32) -> (i32, i32, i32) {
    %c0_i32 = arith.constant 0 : i32
    %c0_i32_0 = arith.constant 0 : i32
    return %arg0, %c0_i32, %arg1 : i32, i32, i32
  }
  func.func @transform_1(%arg0: i32, %arg1: i32) -> (i32, i32, i32) {
    %c0_i32 = arith.constant 0 : i32
    %c0_i32_0 = arith.constant 0 : i32
    return %arg0, %c0_i32, %arg1 : i32, i32, i32
  }
  func.func @transform_2(%arg0: i32, %arg1: i32) -> (i32, i32, i32) {
    %c0_i32 = arith.constant 0 : i32
    %c0_i32_0 = arith.constant 0 : i32
    return %arg0, %c0_i32, %arg1 : i32, i32, i32
  }
  func.func @transform_3(%arg0: i32, %arg1: i32) -> (i32, i32, i32) {
    %c0_i32 = arith.constant 0 : i32
    %c0_i32_0 = arith.constant 0 : i32
    return %arg0, %c0_i32, %arg1 : i32, i32, i32
  }
  func.func @transform_4(%arg0: i32, %arg1: i32) -> (i32, i32, i32) {
    %c0_i32 = arith.constant 0 : i32
    %c0_i32_0 = arith.constant 0 : i32
    return %arg0, %c0_i32, %arg1 : i32, i32, i32
  }
}

</mosaic_0001>

<bundles_post_ra>
// kernel: tpu_custom_call.1
= control target key start
LH: loop header
LB: loop body
LE: loop exit
PB: predicated region body
PF: predicated region fallthrough
CT: control target
= control target key end

     0   :  { %10 = vsyncpa [#allocation3], 0  ;;  %s1252_s0 = inlined_call_operand.vmem [shape: f32[2,19,256], index: 0, kind: input, shape index: {}]   ;;  %s1253_s1 = inlined_call_operand.vmem [shape: s32[2,1,256], index: 1, kind: input, shape index: {}]   ;;  %s1254_s2 = inlined_call_operand.hbm [shape: f32[2,1,256], index: 2, kind: output, shape index: {0}]   ;;  %s1255_s3 = inlined_call_operand.hbm [shape: f32[2,1,128], index: 3, kind: output, shape index: {1}]   ;;  %s1256_s4 = inlined_call_operand.hbm [shape: f32[2,1,128], index: 4, kind: output, shape index: {2}]  }
   0x1   :  { %12 = vsyncpa [#allocation3 + $0x1], 0 }
   0x2   :  { %13 = vsyncpa [#allocation5], 0 }
   0x3   :  { %15 = vsyncpa [#allocation5 + $0x1], 0  ;;  %s1009_s15 = smov 0   ;;  %s1011_s16 = smov 0  }
   0x4   :  { %s1013_s17 = smov 0   ;;  %s1015_s18 = smov 0  }
   0x5   :  { %s1017_s19 = smov 0   ;;  %s1019_s20 = smov 0  }
   0x6 LB: > { %s747_s21 = sadd.s32 4294967295, %s981_s20   ;;  %s1257_s22 = sadd.s32 4294967294, %s981_s20   ;;  %s981_s20 = sphi %s1019_s20, %s21_s20   ;;  %s977_s19 = sphi %s1017_s19, %s1265_s19   ;;  %s973_s18 = sphi %s1015_s18, %s1264_s18   ;;  %s969_s17 = sphi %s1013_s17, %s1263_s17   ;;  %s965_s16 = sphi %s1011_s16, %s1262_s16   ;;  %s961_s15 = sphi %s1009_s15, %s1261_s15  }
   0x7   : > { %s33_s23 = sadd.s32 1, %s977_s19  ;;  %s98_s24 = sadd.s32 1, %s969_s17 }
   0x8   : > { %p35_p0 = scmp.ge.s32.totalorder %s33_s23, 2  ;;  %p108_p1 = scmp.ne.s32.totalorder %s969_s17, %s965_s16 }
   0x9   : > { %p109_p2 = scmp.eq.s32.totalorder %s747_s21, 1  ;;  %p114_p3 = scmp.ne.s32.totalorder %s965_s16, %s961_s15 }
   0xa   : > { %s1267_s23 = smov (%p35_p0, %s33_s23), 0  ;;  %p115_p5 = scmp.eq.s32.totalorder %s1257_s22, 1 }
   0xb   : > { %p1051_p4 = por %p109_p2, %p108_p1  ;;  %s93_s26 = ssub.s32 %s977_s19, %s1267_s23 }
   0xc   : > { %p751_p6 = scmp.ge.s32.totalorder %s981_s20, 1  ;;  %p96_p7 = scmp.eq.s32.totalorder %s93_s26, 0 }
   0xd   : > { %p1060_p8 = por %p115_p5, %p114_p3  ;;  %p214_p9 = scmp.lt.s32.totalorder %s981_s20, 3 }
   0xe   : > { %s1066_s28 = scalar_select %p96_p7, %s969_s17, %s98_s24  }
   0xf   : > { %p215_p10 = pnand %p751_p6, %p214_p9 }
  0x10   : > { %p261_p11 = scmp.lt.s32.totalorder (!%p215_p10), %s973_s18, 1  ;;  %s1170_s12 = sand.u32 (!%p215_p10), 1, %s965_s16  }
  0x11   : > { %218 = sbr.rel (%p215_p10) target bundleno = 250 (0xfa), region = 28  ;;  %s752_s13 = sshll.u32 (!%p215_p10), %s1170_s12, 1 }
  0x12   : > { %s757_s14 = sshll.u32 (!%p215_p10), %s973_s18, 1 }
  0x16   : > { %s1070_s29 = scalar_select %p261_p11, %s973_s18, 1  ;;  %vm288_vm0 = vcmask 1042432   ;;  %v348_v34 = vlaneseq  ;;  %v983_v51 = vmov 0.0  }
  0x18   : > { %s760_s30 = smul.u32 48, %s1070_s29  ;;  %v1097_v37 = vshrl.u32 %v348_v34, 7  ;;  %s754_s8 = sshll.u32 %s1070_s29, 1 }
  0x19   : > { %s277_s11 = scalar_lea.vmem %s1253_s1, %s754_s8  ;;  %s569_s29 = scalar_lea.hbm %s1254_s2, %s757_s14 }
  0x1a   : > { %s268_s7 = scalar_lea.vmem %s1252_s0, %s760_s30  ;;  %v1100_v40 = vadd.s32 8, %v1097_v37  ;;  %vm360_vm1 = vcmp.eq.s32.totalorder %v1097_v37, 0  ;;  %vm366_vm3 = vcmp.eq.s32.totalorder %v1097_v37, 1  ;;  %vm372_vm5 = vcmp.eq.s32.totalorder %v1097_v37, 2  ;;  %v1117_v63 = vld [vmem:[%s277_s11] sm:$0x3] }
  0x1b   : > { %v280_v0 = vld [vmem:[%s268_s7] sm:$0xff]  ;;  %v281_v1 = vld [vmem:[%s268_s7 + $0x8] sm:$0xff]  ;;  %v282_v4 = vld [vmem:[%s268_s7 + $0x10] sm:$0xff]  ;;  %v363_v52 = vsel %vm360_vm1, 0.8373, %v983_v51  ;;  %vm378_vm7 = vcmp.eq.s32.totalorder %v1097_v37, 3 }
  0x1c   : > { %v284_v2 = vld [vmem:[%s268_s7 + $0x20] sm:$0x7]  ;;  %v285_v3 = vld [vmem:[%s268_s7 + $0x28] sm:$0x7]  ;;  %v283_v5 = vld [vmem:[%s268_s7 + $0x18] sm:$0xff]  ;;  %vm409_vm2 = vcmp.eq.s32.totalorder %v1100_v40, 8 }
  0x1d   : > { %v289_v6 = vsel %vm288_vm0, %v284_v2, -inf  ;;  %v298_v7 = vsel %vm288_vm0, %v285_v3, -inf  ;;  %v412_v54 = vsel %vm409_vm2, 0.8786, %v983_v51  ;;  %vm415_vm4 = vcmp.eq.s32.totalorder %v1100_v40, 9  ;;  %s247_s30 = scalar_lea.vmem [#allocation2], %s752_s13 }
  0x1e   : > { %v290_v8 = vmax.f32 %v280_v0, %v289_v6  ;;  %v299_v9 = vmax.f32 %v281_v1, %v298_v7  ;;  %v369_v57 = vsel %vm366_vm3, 0.918, %v363_v52  ;;  %v418_v59 = vsel %vm415_vm4, 1.0023, %v412_v54  ;;  %s571_s5 = sshll.u32 %s247_s30, 4  ;;  %s573_s6 = sshll.u32 %s569_s29, 4  ;;  %s572_s5 = int_to_ptr.vmem [resolvable:$true] %s571_s5  ;;  %s574_s6 = int_to_ptr.hbm [resolvable:$true] %s573_s6 }
  0x1f   : > { %vm421_vm6 = vcmp.eq.s32.totalorder %v1100_v40, 10  ;;  %v375_v62 = vsel %vm372_vm5, 0.866, %v369_v57  ;;  %vm427_vm8 = vcmp.eq.s32.totalorder %v1100_v40, 11  ;;  %vm384_vm9 = vcmp.eq.s32.totalorder %v1097_v37, 4  ;;  %s549_s7 = scalar_lea.sflag [#allocation3], %s1170_s12 }
  0x20   : > { %v291_v10 = vmax.f32 %v290_v8, %v282_v4  ;;  %v300_v11 = vmax.f32 %v299_v9, %v283_v5  ;;  %vm287_vm10 = vcmp.ne.s32.totalorder %v1117_v63, 255  ;;  %vm433_vm11 = vcmp.eq.s32.totalorder %v1100_v40, 12  ;;  %s857_s8 = sshra.s32 %s574_s6, 4  ;;  %s863_s14 = scalar_lea.hbm %s1254_s2, 4  ;;  %s858_s8 = int_to_ptr.hbm [resolvable:$true] %s857_s8 }
  0x21   : > { %vm390_vm12 = vcmp.eq.s32.totalorder %v1097_v37, 5  ;;  %vm439_vm14 = vcmp.eq.s32.totalorder %v1100_v40, 13  ;;  %vm396_vm15 = vcmp.eq.s32.totalorder %v1097_v37, 6  ;;  %vm445_vm2 = vcmp.eq.s32.totalorder %v1100_v40, 14  ;;  %s859_s9 = scalar_lea.hbm %s858_s8, 2  ;;  %p864_p1 = scmp.lt.s32.totalorder %s858_s8, %s1254_s2 }
  0x22   : > { %v292_v12 = vrot.slane %v291_v10, 4  ;;  %v301_v13 = vrot.slane %v300_v11, 4  ;;  %vm402_vm3 = vcmp.eq.s32.totalorder %v1097_v37, 7  ;;  %vm451_vm5 = vcmp.eq.s32.totalorder %v1100_v40, 15  ;;  %p860_p12 = scmp.ne.s32.totalorder %s858_s8, %s859_s9  ;;  %p865_p2 = scmp.lt.s32.totalorder %s863_s14, %s859_s9 }
  0x24   : > { %v293_v14 = vmax.f32 %v291_v10, %v292_v12  ;;  %v302_v15 = vmax.f32 %v300_v11, %v301_v13  ;;  %v347_v11 = vsel %vm287_vm10, %v1117_v63, 0  ;;  %p861_p13 = pnand %p860_p12, %p1051_p4  ;;  %p866_p3 = por %p865_p2, %p864_p1 }
  0x26   : > { %v294_v16 = vrot.slane %v293_v14, 2  ;;  %v303_v17 = vrot.slane %v302_v15, 2  ;;  %p862_p0 = pneg %p861_p13 }
  0x28   : > { %v295_v18 = vmax.f32 %v293_v14, %v294_v16  ;;  %v304_v19 = vmax.f32 %v302_v15, %v303_v17  ;;  %v352_v15 = vperm.slane %v347_v11, 0  ;;  %v353_v16 = vperm.slane %v347_v11, 1  ;;  %p867_p5 = pnand %p866_p3, %p862_p0 }
  0x2a   : > { %v296_v20 = vrot.slane %v295_v18, 1  ;;  %v305_v21 = vrot.slane %v304_v19, 1 }
  0x2c   : > { %v297_v22 = vmax.f32 %v295_v18, %v296_v20  ;;  %v306_v23 = vmax.f32 %v304_v19, %v305_v21 }
  0x2e   : > { %v1078_v24 = vsub.f32 %v280_v0, %v297_v22  ;;  %v1080_v25 = vsub.f32 %v281_v1, %v306_v23  ;;  %v1082_v26 = vsub.f32 %v282_v4, %v297_v22  ;;  %v1084_v27 = vsub.f32 %v283_v5, %v306_v23 }
  0x2f   : > { %v1086_v28 = vsub.f32 %v284_v2, %v297_v22  ;;  %v1088_v29 = vsub.f32 %v285_v3, %v306_v23  ;;  %v424_v1 = vsel %vm421_vm6, 0.9539, %v418_v59  ;;  %v1121_v3 = vadd.s32 16, %v1097_v37 }
  0x30   : > { %v313_v30 = vmul.f32 1.442695, %v1078_v24  ;;  %v315_v31 = vmul.f32 1.442695, %v1080_v25  ;;  %v317_v32 = vmul.f32 1.442695, %v1082_v26  ;;  %vm354_vm6 = vcmp.eq.s32.totalorder %v1097_v37, %v352_v15 }
  0x31   : > { %v319_v33 = vmul.f32 1.442695, %v1084_v27  ;;  %v321_v35 = vmul.f32 1.442695, %v1086_v28  ;;  %v323_v36 = vmul.f32 1.442695, %v1088_v29 }
  0x32   : > { %827 = vpow2.f32 %v313_v30  ;;  %v381_v5 = vsel %vm378_vm7, 1.0345, %v375_v62  ;;  %v430_v7 = vsel %vm427_vm8, 0.9843, %v424_v1  ;;  %vm458_vm13 = vcmp.eq.s32.totalorder %v1121_v3, 16 }
  0x33   : > { %829 = vpow2.f32 %v315_v31  ;;  %v387_v10 = vsel %vm384_vm9, 1.0166, %v381_v5  ;;  %v436_v12 = vsel %vm433_vm11, 1.1116, %v430_v7  ;;  %v461_v14 = vsel %vm458_vm13, 1.0865, %v983_v51 }
  0x34   : > { %831 = vpow2.f32 %v317_v32  ;;  %v393_v13 = vsel %vm390_vm12, 0.9969, %v387_v10  ;;  %vm464_vm1 = vcmp.eq.s32.totalorder %v1121_v3, 17  ;;  %v442_v17 = vsel %vm439_vm14, 0.9037, %v436_v12 }
  0x35   : > { %833 = vpow2.f32 %v319_v33  ;;  %v399_v18 = vsel %vm396_vm15, 0.9754, %v393_v13  ;;  %v467_v19 = vsel %vm464_vm1, 1.1529, %v461_v14  ;;  %vm470_vm4 = vcmp.eq.s32.totalorder %v1121_v3, 18 }
  0x36   : > { %835 = vpow2.f32 %v321_v35  ;;  %v448_v21 = vsel %vm445_vm2, 1.0865, %v442_v17  ;;  %vm355_vm7 = vcmp.eq.s32.totalorder %v1097_v37, %v353_v16  ;;  %vm356_vm8 = vcmp.eq.s32.totalorder %v1100_v40, %v352_v15 }
  0x37   : > { %837 = vpow2.f32 %v323_v36  ;;  %vm357_vm9 = vcmp.eq.s32.totalorder %v1100_v40, %v353_v16  ;;  %v405_v31 = vsel %vm402_vm3, 1.0489, %v399_v18  ;;  %v473_v32 = vsel %vm470_vm4, 1.0507, %v467_v19 }
  0x38   : > { %v828_v38 = vpop.eup %827  ;;  %v454_v33 = vsel %vm451_vm5, 1.0955, %v448_v21  ;;  %vm358_vm11 = vcmp.eq.s32.totalorder %v1121_v3, %v352_v15  ;;  %vm359_vm12 = vcmp.eq.s32.totalorder %v1121_v3, %v353_v16  ;;  %vm513_vm13 = vcmask 1040384  }
  0x39   : > { %v830_v39 = vpop.eup %829 }
  0x3a   : > { %v832_v41 = vpop.eup %831 }
  0x3b   : > { %v834_v42 = vpop.eup %833  ;;  %v325_v43 = vadd.f32 %v832_v41, %v828_v38 }
  0x3c   : > { %v836_v44 = vpop.eup %835  ;;  %v334_v45 = vadd.f32 %v834_v42, %v830_v39 }
  0x3d   : > { %v838_v46 = vpop.eup %837  ;;  %v326_v47 = vsel %vm288_vm0, %v836_v44, 0.0 }
  0x3e   : > { %v327_v48 = vadd.f32 %v326_v47, %v325_v43  ;;  %v335_v49 = vsel %vm288_vm0, %v838_v46, 0.0 }
  0x3f   : > { %v336_v50 = vadd.f32 %v335_v49, %v334_v45 }
  0x40   : > { %v328_v53 = vrot.slane %v327_v48, 4 }
  0x41   : > { %v337_v55 = vrot.slane %v336_v50, 4 }
  0x42   : > { %v329_v56 = vadd.f32 %v328_v53, %v327_v48 }
  0x43   : > { %v338_v58 = vadd.f32 %v337_v55, %v336_v50 }
  0x44   : > { %v330_v60 = vrot.slane %v329_v56, 2 }
  0x45   : > { %v339_v61 = vrot.slane %v338_v58, 2 }
  0x46   : > { %v331_v0 = vadd.f32 %v330_v60, %v329_v56 }
  0x47   : > { %v340_v2 = vadd.f32 %v339_v61, %v338_v58 }
  0x48   : > { %v332_v4 = vrot.slane %v331_v0, 1 }
  0x49   : > { %v341_v6 = vrot.slane %v340_v2, 1 }
  0x4a   : > { %v333_v8 = vadd.f32 %v332_v4, %v331_v0 }
  0x4b   : > { %v342_v9 = vadd.f32 %v341_v6, %v340_v2 }
  0x4c   : > { %839 = vlog2.f32 %v333_v8 }
  0x4d   : > { %841 = vlog2.f32 %v342_v9 }
  0x52   : > { %v840_v20 = vpop.eup %839 }
  0x53   : > { %v842_v22 = vpop.eup %841  ;;  %v344_v23 = vmul.f32 0.6931472, %v840_v20 }
  0x54   : > { %v346_v30 = vmul.f32 0.6931472, %v842_v22 }
  0x55   : > { %v474_v35 = vsub.f32 %v344_v23, %v1078_v24  ;;  %v476_v36 = vsub.f32 %v344_v23, %v1082_v26  ;;  %v478_v38 = vsub.f32 %v344_v23, %v1086_v28 }
  0x56   : > { %v475_v39 = vsub.f32 %v346_v30, %v1080_v25  ;;  %v477_v41 = vsub.f32 %v346_v30, %v1084_v27  ;;  %v479_v42 = vsub.f32 %v346_v30, %v1088_v29 }
  0x57   : > { %v480_v43 = vmul.f32 %v474_v35, %v405_v31  ;;  %v482_v44 = vmul.f32 %v476_v36, %v454_v33  ;;  %v484_v45 = vmul.f32 %v478_v38, %v473_v32 }
  0x58   : > { %v481_v46 = vmul.f32 %v475_v39, %v405_v31  ;;  %v483_v47 = vmul.f32 %v477_v41, %v454_v33  ;;  %v485_v24 = vmul.f32 %v479_v42, %v473_v32 }
  0x59   : > { %v486_v26 = vsel %vm354_vm6, %v480_v43, 0.0  ;;  %v488_v28 = vsel %vm356_vm8, %v482_v44, 0.0  ;;  %v490_v48 = vsel %vm358_vm11, %v484_v45, 0.0 }
  0x5a   : > { %v487_v25 = vsel %vm355_vm7, %v481_v46, 0.0  ;;  %v489_v27 = vsel %vm357_vm9, %v483_v47, 0.0  ;;  %v491_v29 = vsel %vm359_vm12, %v485_v24, 0.0  ;;  %v492_v49 = vadd.f32 %v488_v28, %v486_v26 }
  0x5b   : > { %v493_v50 = vsel %vm288_vm0, %v490_v48, 0.0  ;;  %v501_v52 = vadd.f32 %v489_v27, %v487_v25  ;;  %v502_v53 = vsel %vm288_vm0, %v491_v29, 0.0 }
  0x5c   : > { %v494_v54 = vadd.f32 %v493_v50, %v492_v49 }
  0x5d   : > { %v503_v55 = vadd.f32 %v502_v53, %v501_v52 }
  0x5e   : > { %v495_v56 = vrot.slane %v494_v54, 4 }
  0x5f   : > { %v504_v57 = vrot.slane %v503_v55, 4 }
  0x60   : > { %v496_v58 = vadd.f32 %v495_v56, %v494_v54 }
  0x61   : > { %v505_v59 = vadd.f32 %v504_v57, %v503_v55 }
  0x62   : > { %v497_v60 = vrot.slane %v496_v58, 2 }
  0x63   : > { %v506_v61 = vrot.slane %v505_v59, 2 }
  0x64   : > { %v498_v37 = vadd.f32 %v497_v60, %v496_v58 }
  0x65   : > { %v507_v62 = vadd.f32 %v506_v61, %v505_v59 }
  0x66   : > { %v499_v0 = vrot.slane %v498_v37, 1 }
  0x67   : > { %v508_v40 = vrot.slane %v507_v62, 1 }
  0x68   : > { %v500_v1 = vadd.f32 %v499_v0, %v498_v37 }
  0x69   : > { %v509_v2 = vadd.f32 %v508_v40, %v507_v62 }
  0x6b   : > { %v512_v3 = vrot.slane %v509_v2, 7 }
  0x6d   : > { %v514_v4 = vsel %vm513_vm13, %v500_v1, %v512_v3 }
  0x6e   : > { %v516_v5 = vsel %vm287_vm10, %v514_v4, 0.0  ;;  %vm519_vm10 = vcmp.lt.s32.totalorder %v348_v34, 256 }
  0x6f   : > { %vm522_vm0 = vcmp.gt.f32.partialorder %v516_v5, 0.35667497  ;;  %521 = vst.msk [vmem:[%s247_s30] sm:$0x3] %vm519_vm10, %v516_v5 }
  0x70   : > { %v755_v6 = vsel %vm522_vm0, 1.0, %v983_v51  ;;  %v535_v7 = vsel %vm522_vm0, %v516_v5, 0.0 }
  0x71   : > { %v526_v8 = vperm.slane %v755_v6, 0  ;;  %v527_v9 = vperm.slane %v755_v6, 1  ;;  %v537_v12 = vperm.slane %v535_v7, 0  ;;  %v538_v13 = vperm.slane %v535_v7, 1 }
  0x73   : > { %v530_v10 = vsel %vm513_vm13, %v526_v8, 0.0  ;;  %v531_v11 = vsel %vm513_vm13, %v527_v9, 0.0  ;;  %v541_v15 = vsel %vm513_vm13, %v537_v12, 0.0  ;;  %v542_v63 = vsel %vm513_vm13, %v538_v13, 0.0 }
  0x74   : > { %v532_v14 = vadd.f32 %v531_v11, %v530_v10  ;;  %v543_v16 = vadd.f32 %v542_v63, %v541_v15 }
  0x76   : > { %533 = vadd.xlane.f32.xlu0 %v532_v14 }
  0x7e   : > { %544 = vadd.xlane.f32.xlu0 %v543_v16 }
  0x7f   : > { %870 = shalt.err (!%p867_p5)
}
  0x80   : > { %761 = dma.vmem_to_hbm [thread:$0]  (%p1051_p4), %s572_s5, 32, %s574_s6, %s549_s7  }
  0x81   : > { %s583_s30 = scalar_lea.hbm %s1255_s3, %s973_s18  ;;  %s253_s10 = scalar_lea.vmem [#allocation4], %s1170_s12 }
  0x82   : > { %s585_s11 = sshll.u32 %s253_s10, 4  ;;  %s1196_s8 = sand.u32 1, %s747_s21   ;;  %s586_s11 = int_to_ptr.vmem [resolvable:$true] %s585_s11 }
  0x83   : > { %s587_s9 = sshll.u32 %s583_s30, 4  ;;  %s597_s5 = scalar_lea.hbm %s1256_s4, %s973_s18  ;;  %s588_s9 = int_to_ptr.hbm [resolvable:$true] %s587_s9 }
  0x84   : > { %s554_s6 = scalar_lea.sflag [#allocation5], %s1196_s8  ;;  %s885_s7 = sshra.s32 %s588_s9, 4  ;;  %s886_s7 = int_to_ptr.hbm [resolvable:$true] %s885_s7 }
  0x85   : > { %s887_s24 = scalar_lea.hbm %s886_s7, 1  ;;  %s891_s29 = scalar_lea.hbm %s1255_s3, 2 }
  0x86   : > { %p888_p6 = scmp.ne.s32.totalorder %s886_s7, %s887_s24  ;;  %p892_p10 = scmp.lt.s32.totalorder %s886_s7, %s1255_s3 }
  0x87   : > { %p893_p11 = scmp.lt.s32.totalorder %s891_s29, %s887_s24 }
  0x88   : > { %p889_p7 = pnand %p888_p6, %p1051_p4 }
  0x89   : > { %p894_p12 = por %p893_p11, %p892_p10 }
  0x8a   : > { %p890_p9 = pneg %p889_p7 }
  0x8c   : > { %p895_p13 = pnand %p894_p12, %p890_p9 }
  0xe9   : > { %v534_v34 = vpop.xlane.xlu0 %533 }
  0xea   : > { %546 = vst [vmem:[%s253_s10] sm:$0x1] %v534_v34 }
  0xeb   : > { %898 = shalt.err (!%p895_p13)
}
  0xec   : > { %762 = dma.vmem_to_hbm [thread:$0]  (%p1051_p4), %s586_s11, 16, %s588_s9, %s554_s6  }
  0xed   : > { %s259_s18 = scalar_lea.vmem [#allocation6], %s1170_s12  ;;  %s601_s14 = sshll.u32 %s597_s5, 4  ;;  %s602_s14 = int_to_ptr.hbm [resolvable:$true] %s601_s14 }
  0xee   : > { %s599_s10 = sshll.u32 %s259_s18, 4  ;;  %s913_s22 = sshra.s32 %s602_s14, 4  ;;  %s600_s10 = int_to_ptr.vmem [resolvable:$true] %s599_s10  ;;  %s914_s22 = int_to_ptr.hbm [resolvable:$true] %s913_s22 }
  0xef   : > { %s915_s13 = scalar_lea.hbm %s914_s22, 1  ;;  %s919_s21 = scalar_lea.hbm %s1256_s4, 2 }
  0xf0   : > { %p916_p0 = scmp.ne.s32.totalorder %s914_s22, %s915_s13  ;;  %p920_p3 = scmp.lt.s32.totalorder %s914_s22, %s1256_s4 }
  0xf1   : > { %v545_v51 = vpop.xlane.xlu0 %544  ;;  %p921_p5 = scmp.lt.s32.totalorder %s919_s21, %s915_s13 }
  0xf2   : > { %547 = vst [vmem:[%s259_s18] sm:$0x1] %v545_v51  ;;  %p917_p1 = pnand %p916_p0, %p1051_p4 }
  0xf3   : > { %p922_p6 = por %p921_p5, %p920_p3 }
  0xf4   : > { %p918_p2 = pneg %p917_p1 }
  0xf6   : > { %p923_p7 = pnand %p922_p6, %p918_p2 }
  0xf8   : > { %926 = shalt.err (!%p923_p7)
}
  0xf9   : > { %763 = dma.vmem_to_hbm [thread:$0]  (%p1051_p4), %s600_s10, 16, %s602_s14, %s554_s6  }
  0xfa PF: > { %p777_p9 = scmp.ge.s32.totalorder %s981_s20, 2  ;;  %s613_s12 = sand.u32 1, %s961_s15  }
  0xfb   : > { %s614_s9 = scalar_lea.sflag [#allocation3], %s613_s12 }
  0xfc   : > { %p768_p10 = pnand %p777_p9, %p1060_p8 }
  0xfe   : > { %p769_p11 = pneg %p768_p10 }
 0x100   : > { %952 = dma.done.wait (%p769_p11), %s614_s9, 32  }
 0x101   : > { %954 = vsyncadd (%p769_p11), %s614_s9, 4294967264  ;;  %s1260_s5 = sadd.s32 4294967294, %s981_s20  }
 0x102   : > { %s623_s29 = sand.u32 1, %s1260_s5  }
 0x103   : > { %s624_s30 = scalar_lea.sflag [#allocation5], %s623_s29 }
 0x104   : > { %956 = dma.done.wait (%p769_p11), %s624_s30, 32  }
 0x105   : > { %958 = vsyncadd (%p769_p11), %s624_s30, 4294967264  ;;  %s21_s20 = sadd.s32 1, %s981_s20   ;;  %s1261_s15 = smov %s965_s16 }
 0x106   : > { %p18_p4 = scmp.ge.s32.totalorder %s21_s20, 4   ;;  %s1262_s16 = smov %s969_s17 }
 0x107   : > { %s1263_s17 = smov %s1066_s28  ;;  %s1264_s18 = smov %s977_s19 }
 0x108   : > { %s1265_s19 = smov %s1267_s23  ;;  %20 = sbr.rel (!%p18_p4) target bundleno = 6 (0x6), region = 98 }
 0x10d   :  { %638 = vsyncpa [#allocation3], 1 }
 0x10e   :  { %640 = vsyncpa [#allocation3 + $0x1], 1 }
 0x10f   :  { %641 = vsyncpa [#allocation5], 1 }
 0x110   :  { %643 = vsyncpa [#allocation5 + $0x1], 1 }

</bundles_post_ra>
